<compile_context>
chip_gen: v5e
topology: v5e:2x2
jax: 0.10.0
libtpu: 0.0.40
codegen_flags: <defaults>
</compile_context>

<pallas_src>
import jax
import jax.numpy as jnp
from jax.experimental import pallas as pl
from jax.experimental.pallas import tpu as pltpu


def _round_up(x, m):
    return (x + m - 1) // m * m


def actor_kernel(x_ref, w1_ref, b1_ref, w2_ref, b2_ref, wmu_ref, bmu_ref, o_ref):
    # fc1 + relu  (bf16 matmul inputs, f32 accumulate, f32 epilogue)
    x = x_ref[...].astype(jnp.bfloat16)          # no-op if caller feeds bf16
    h1 = jnp.dot(x, w1_ref[...], preferred_element_type=jnp.float32)
    h1 = jnp.maximum(h1 + b1_ref[...], 0.0)
    # fc2 + relu
    h2 = jnp.dot(h1.astype(jnp.bfloat16), w2_ref[...],
                 preferred_element_type=jnp.float32)
    h2 = jnp.maximum(h2 + b2_ref[...], 0.0)
    # mu + tanh (EUP), store lane-dense (A_pad = multiple of 128) as bf16
    mu = jnp.dot(h2.astype(jnp.bfloat16), wmu_ref[...],
                 preferred_element_type=jnp.float32)
    o_ref[...] = jnp.tanh(mu + bmu_ref[...]).astype(o_ref.dtype)


def make_kernel_params(params):
    """One-time conversion of f32 [in, out] params to kernel-ready form.

    Call this once after init / each optimizer update — NOT on every forward —
    so the bf16 casts and head padding are off the per-step path.
    """
    A = params["wmu"].shape[1]
    A_pad = _round_up(A, 128)
    return {
        "w1": params["w1"].astype(jnp.bfloat16),
        "b1": params["b1"].astype(jnp.float32),
        "w2": params["w2"].astype(jnp.bfloat16),
        "b2": params["b2"].astype(jnp.float32),
        "wmu": jnp.pad(params["wmu"], ((0, 0), (0, A_pad - A))).astype(jnp.bfloat16),
        "bmu": jnp.pad(params["bmu"], ((0, 0), (0, A_pad - A))).astype(jnp.float32),
        "n_actions": A,  # static python int
    }


def actor_forward(state, kparams, *, block_b=4096, out_dtype=jnp.bfloat16):
    """Fused actor MLP forward pass.

    state:   [B, input_dims]  (float32 or bfloat16 — fed as-is, no wrapper cast)
    kparams: output of make_kernel_params()
    returns: [B, n_actions] in (-1, 1), dtype `out_dtype` (default bf16)
    """
    B, D = state.shape
    w1, b1 = kparams["w1"], kparams["b1"]
    w2, b2 = kparams["w2"], kparams["b2"]
    wmu, bmu = kparams["wmu"], kparams["bmu"]
    A = kparams["n_actions"]
    F1, F2, A_pad = w1.shape[1], w2.shape[1], wmu.shape[1]

    # Batch tile: multiple of 8 sublanes, big enough to amortize per-step
    # overhead, but capped at ceil(B/2) so >= 2 blocks whenever possible
    # (lets the v7x megacore split the "parallel" axis across both TCs).
    TB = max(8, min(_round_up(block_b, 8), _round_up(pl.cdiv(B, 2), 8)))
    n_blocks = pl.cdiv(B, TB)          # ragged tail handled by Pallas masking
    B_eff = n_blocks * TB

    const2 = lambda i: (0, 0)  # weights/biases: same block each step -> VMEM-resident

    cost = pl.CostEstimate(
        flops=2 * B_eff * (D * F1 + F1 * F2 + F2 * A_pad),
        transcendentals=B_eff * A_pad,
        bytes_accessed=(state.size * state.dtype.itemsize
                        + w1.size * 2 + w2.size * 2 + wmu.size * 2
                        + b1.size * 4 + b2.size * 4 + bmu.size * 4
                        + B * A_pad * jnp.dtype(out_dtype).itemsize),
    )

    out = pl.pallas_call(
        actor_kernel,
        out_shape=jax.ShapeDtypeStruct((B, A_pad), out_dtype),
        grid=(n_blocks,),
        in_specs=[
            pl.BlockSpec((TB, D), lambda i: (i, 0)),      # x: tiled over batch
            pl.BlockSpec(w1.shape, const2),
            pl.BlockSpec(b1.shape, const2),
            pl.BlockSpec(w2.shape, const2),
            pl.BlockSpec(b2.shape, const2),
            pl.BlockSpec(wmu.shape, const2),
            pl.BlockSpec(bmu.shape, const2),
        ],
        out_specs=pl.BlockSpec((TB, A_pad), lambda i: (i, 0)),
        compiler_params=pltpu.CompilerParams(
            dimension_semantics=("parallel",),            # shard batch across TCs (v7x)
        ),
        cost_estimate=cost,
    )(state, w1, b1, w2, b2, wmu, bmu)

    return out[:, :A]


def init_params(key, input_dims, fc1_dims, fc2_dims, n_actions):
    """Init matching PyTorch nn.Linear default (uniform +/- 1/sqrt(fan_in)),
    weights stored as [in, out]."""
    ks = jax.random.split(key, 6)

    def lin(kw, kb, fan_in, fan_out):
        bound = 1.0 / jnp.sqrt(fan_in)
        w = jax.random.uniform(kw, (fan_in, fan_out), jnp.float32, -bound, bound)
        b = jax.random.uniform(kb, (1, fan_out), jnp.float32, -bound, bound)
        return w, b

    w1, b1 = lin(ks[0], ks[1], input_dims, fc1_dims)
    w2, b2 = lin(ks[2], ks[3], fc1_dims, fc2_dims)
    wmu, bmu = lin(ks[4], ks[5], fc2_dims, n_actions)
    return {"w1": w1, "b1": b1, "w2": w2, "b2": b2, "wmu": wmu, "bmu": bmu}


def actor_forward_ref(state, p):
    """Pure-JAX f32 reference (PyTorch-equivalent semantics)."""
    h1 = jnp.maximum(state @ p["w1"] + p["b1"], 0.0)
    h2 = jnp.maximum(h1 @ p["w2"] + p["b2"], 0.0)
    return jnp.tanh(h2 @ p["wmu"] + p["bmu"])


if __name__ == "__main__":
    # Small shapes consistent with ActorNetwork(alpha, input_dims=(16,),
    # fc1_dims=64, fc2_dims=32, n_actions=8, ...)
    batch, input_dims, fc1_dims, fc2_dims, n_actions = 8, 16, 64, 32, 8

    key = jax.random.PRNGKey(0)
    k_params, k_state = jax.random.split(key)
    params = init_params(k_params, input_dims, fc1_dims, fc2_dims, n_actions)
    state = jax.random.normal(k_state, (batch, input_dims), jnp.float32)

    # One-time param prep (off the per-step path), then the fused forward.
    kparams = make_kernel_params(params)
    out = actor_forward(state, kparams)
    jax.block_until_ready(out)

    ref = actor_forward_ref(state, params)
    assert out.shape == (batch, n_actions)
    out_f32 = out.astype(jnp.float32)
    # bf16 weights + bf16 output store vs. f32 reference; tanh-bounded output.
    assert jnp.allclose(out_f32, ref, atol=3e-2, rtol=0.0), "mismatch vs JAX reference"
    assert jnp.all(jnp.abs(out_f32) <= 1.0), "tanh range violated"

    print("KERNEL_OK")
</pallas_src>

<mosaic_0001>
module attributes {stable_mosaic.version = 11 : i64} {
  func.func @actor_kernel(%arg0: i32, %arg1: memref<8x16xf32, #tpu.memory_space<vmem>>, %arg2: memref<16x64xbf16, #tpu.memory_space<vmem>>, %arg3: memref<1x64xf32, #tpu.memory_space<vmem>>, %arg4: memref<64x32xbf16, #tpu.memory_space<vmem>>, %arg5: memref<1x32xf32, #tpu.memory_space<vmem>>, %arg6: memref<32x128xbf16, #tpu.memory_space<vmem>>, %arg7: memref<1x128xf32, #tpu.memory_space<vmem>>, %arg8: memref<8x128xbf16, #tpu.memory_space<vmem>>) attributes {dimension_semantics = [#tpu.dimension_semantics<parallel>], iteration_bounds = array<i64: 1>, scalar_prefetch = 0 : i64, scratch_operands = 0 : i64, tpu.core_type = #tpu.core_type<tc>, window_params = [{transform_indices = @transform_0, window_bounds = array<i64: 8, 16>}, {pipeline_mode = #tpu.pipeline_mode<synchronous>, transform_indices = @transform_1, window_bounds = array<i64: 16, 64>}, {pipeline_mode = #tpu.pipeline_mode<synchronous>, transform_indices = @transform_2, window_bounds = array<i64: 1, 64>}, {pipeline_mode = #tpu.pipeline_mode<synchronous>, transform_indices = @transform_3, window_bounds = array<i64: 64, 32>}, {pipeline_mode = #tpu.pipeline_mode<synchronous>, transform_indices = @transform_4, window_bounds = array<i64: 1, 32>}, {pipeline_mode = #tpu.pipeline_mode<synchronous>, transform_indices = @transform_5, window_bounds = array<i64: 32, 128>}, {pipeline_mode = #tpu.pipeline_mode<synchronous>, transform_indices = @transform_6, window_bounds = array<i64: 1, 128>}, {transform_indices = @transform_7, window_bounds = array<i64: 8, 128>}]} {
    %c0 = arith.constant 0 : index
    %c0_0 = arith.constant 0 : index
    %0 = vector.load %arg1[%c0, %c0_0] : memref<8x16xf32, #tpu.memory_space<vmem>>, vector<8x16xf32>
    %1 = arith.truncf %0 : vector<8x16xf32> to vector<8x16xbf16>
    %c0_1 = arith.constant 0 : index
    %c0_2 = arith.constant 0 : index
    %2 = vector.load %arg2[%c0_1, %c0_2] : memref<16x64xbf16, #tpu.memory_space<vmem>>, vector<16x64xbf16>
    %cst = arith.constant dense<0.000000e+00> : vector<8x64xf32>
    %3 = tpu.matmul %1, %2, %cst {dimension_numbers = #tpu.dot_dimension_numbers<[1], [0], [0], [1], [0, 0, 1, 1], [], []>} : vector<8x16xbf16>, vector<16x64xbf16>, vector<8x64xf32> -> vector<8x64xf32>
    %c0_3 = arith.constant 0 : index
    %c0_4 = arith.constant 0 : index
    %4 = vector.load %arg3[%c0_3, %c0_4] : memref<1x64xf32, #tpu.memory_space<vmem>>, vector<1x64xf32>
    %5 = vector.broadcast %4 : vector<1x64xf32> to vector<8x64xf32>
    %6 = arith.addf %3, %5 : vector<8x64xf32>
    %cst_5 = arith.constant 0.000000e+00 : f32
    %7 = vector.broadcast %cst_5 : f32 to vector<8x64xf32>
    %8 = arith.maximumf %6, %7 : vector<8x64xf32>
    %9 = arith.truncf %8 : vector<8x64xf32> to vector<8x64xbf16>
    %c0_6 = arith.constant 0 : index
    %c0_7 = arith.constant 0 : index
    %10 = vector.load %arg4[%c0_6, %c0_7] : memref<64x32xbf16, #tpu.memory_space<vmem>>, vector<64x32xbf16>
    %cst_8 = arith.constant dense<0.000000e+00> : vector<8x32xf32>
    %11 = tpu.matmul %9, %10, %cst_8 {dimension_numbers = #tpu.dot_dimension_numbers<[1], [0], [0], [1], [0, 0, 1, 1], [], []>} : vector<8x64xbf16>, vector<64x32xbf16>, vector<8x32xf32> -> vector<8x32xf32>
    %c0_9 = arith.constant 0 : index
    %c0_10 = arith.constant 0 : index
    %12 = vector.load %arg5[%c0_9, %c0_10] : memref<1x32xf32, #tpu.memory_space<vmem>>, vector<1x32xf32>
    %13 = vector.broadcast %12 : vector<1x32xf32> to vector<8x32xf32>
    %14 = arith.addf %11, %13 : vector<8x32xf32>
    %cst_11 = arith.constant 0.000000e+00 : f32
    %15 = vector.broadcast %cst_11 : f32 to vector<8x32xf32>
    %16 = arith.maximumf %14, %15 : vector<8x32xf32>
    %17 = arith.truncf %16 : vector<8x32xf32> to vector<8x32xbf16>
    %c0_12 = arith.constant 0 : index
    %c0_13 = arith.constant 0 : index
    %18 = vector.load %arg6[%c0_12, %c0_13] : memref<32x128xbf16, #tpu.memory_space<vmem>>, vector<32x128xbf16>
    %cst_14 = arith.constant dense<0.000000e+00> : vector<8x128xf32>
    %19 = tpu.matmul %17, %18, %cst_14 {dimension_numbers = #tpu.dot_dimension_numbers<[1], [0], [0], [1], [0, 0, 1, 1], [], []>} : vector<8x32xbf16>, vector<32x128xbf16>, vector<8x128xf32> -> vector<8x128xf32>
    %c0_15 = arith.constant 0 : index
    %c0_16 = arith.constant 0 : index
    %20 = vector.load %arg7[%c0_15, %c0_16] : memref<1x128xf32, #tpu.memory_space<vmem>>, vector<1x128xf32>
    %21 = vector.broadcast %20 : vector<1x128xf32> to vector<8x128xf32>
    %22 = arith.addf %19, %21 : vector<8x128xf32>
    %23 = math.tanh %22 : vector<8x128xf32>
    %24 = arith.truncf %23 : vector<8x128xf32> to vector<8x128xbf16>
    %c0_17 = arith.constant 0 : index
    %c0_18 = arith.constant 0 : index
    %25 = vector.load %arg8[%c0_17, %c0_18] : memref<8x128xbf16, #tpu.memory_space<vmem>>, vector<8x128xbf16>
    tpu.vector_store %arg8[%c0_17, %c0_18], %24 {strides = array<i32>} : memref<8x128xbf16, #tpu.memory_space<vmem>>, vector<8x128xbf16>,
    return
  }
  func.func @transform_0(%arg0: i32) -> (i32, i32) {
    %c0_i32 = arith.constant 0 : i32
    %c0_i32_0 = arith.constant 0 : i32
    return %arg0, %c0_i32 : i32, i32
  }
  func.func @transform_1(%arg0: i32) -> (i32, i32) {
    %c0_i32 = arith.constant 0 : i32
    %c0_i32_0 = arith.constant 0 : i32
    %c0_i32_1 = arith.constant 0 : i32
    return %c0_i32, %c0_i32_0 : i32, i32
  }
  func.func @transform_2(%arg0: i32) -> (i32, i32) {
    %c0_i32 = arith.constant 0 : i32
    %c0_i32_0 = arith.constant 0 : i32
    %c0_i32_1 = arith.constant 0 : i32
    return %c0_i32, %c0_i32_0 : i32, i32
  }
  func.func @transform_3(%arg0: i32) -> (i32, i32) {
    %c0_i32 = arith.constant 0 : i32
    %c0_i32_0 = arith.constant 0 : i32
    %c0_i32_1 = arith.constant 0 : i32
    return %c0_i32, %c0_i32_0 : i32, i32
  }
  func.func @transform_4(%arg0: i32) -> (i32, i32) {
    %c0_i32 = arith.constant 0 : i32
    %c0_i32_0 = arith.constant 0 : i32
    %c0_i32_1 = arith.constant 0 : i32
    return %c0_i32, %c0_i32_0 : i32, i32
  }
  func.func @transform_5(%arg0: i32) -> (i32, i32) {
    %c0_i32 = arith.constant 0 : i32
    %c0_i32_0 = arith.constant 0 : i32
    %c0_i32_1 = arith.constant 0 : i32
    return %c0_i32, %c0_i32_0 : i32, i32
  }
  func.func @transform_6(%arg0: i32) -> (i32, i32) {
    %c0_i32 = arith.constant 0 : i32
    %c0_i32_0 = arith.constant 0 : i32
    %c0_i32_1 = arith.constant 0 : i32
    return %c0_i32, %c0_i32_0 : i32, i32
  }
  func.func @transform_7(%arg0: i32) -> (i32, i32) {
    %c0_i32 = arith.constant 0 : i32
    %c0_i32_0 = arith.constant 0 : i32
    return %arg0, %c0_i32 : i32, i32
  }
}

</mosaic_0001>

<bundles_post_ra>
// kernel: tpu_custom_call.1
= control target key start
LH: loop header
LB: loop body
LE: loop exit
PB: predicated region body
PF: predicated region fallthrough
CT: control target
= control target key end

     0   :  { %vm42_vm0 = vcmask 130048   ;;  %s319_s0 = inlined_call_operand.vmem [shape: f32[8,16], index: 0, kind: input, shape index: {}]   ;;  %s320_s1 = inlined_call_operand.vmem [shape: bf16[16,64], index: 1, kind: input, shape index: {}]   ;;  %s321_s2 = inlined_call_operand.vmem [shape: f32[1,64], index: 2, kind: input, shape index: {}]   ;;  %s322_s3 = inlined_call_operand.vmem [shape: bf16[64,32], index: 3, kind: input, shape index: {}]   ;;  %s323_s4 = inlined_call_operand.vmem [shape: f32[1,32], index: 4, kind: input, shape index: {}]   ;;  %s324_s5 = inlined_call_operand.vmem [shape: bf16[32,128], index: 5, kind: input, shape index: {}]   ;;  %s325_s6 = inlined_call_operand.vmem [shape: f32[1,128], index: 6, kind: input, shape index: {}]   ;;  %s326_s7 = inlined_call_operand.hbm [shape: bf16[8,128], index: 7, kind: output, shape index: {}]  }
   0x1   :  { %v203_v0 = vld [vmem:[%s320_s1] sm:$0xff]  ;;  %v207_v2 = vld [vmem:[%s322_s3 + $0x18] sm:$0xff]  ;;  %v206_v4 = vld [vmem:[%s322_s3 + $0x10] sm:$0xff] }
   0x2   :  { %v28_v1 = vld [vmem:[%s319_s0] sm:$0xff]  ;;  %53 = vmatpush.bf16.msra.mxu0 %v203_v0  ;;  %105 = vmatpush.bf16.msra.mxu1 %v207_v2 }
   0x3   :  { %v29_v3 = vpack.c.bf16 %v28_v1, %v28_v1 }
   0x4   :  { %12 = vsyncpa [#allocation3], 0  ;;  %v205_v5 = vld [vmem:[%s322_s3 + $0x8] sm:$0xff]  ;;  %v204_v6 = vld [vmem:[%s322_s3] sm:$0xff]  ;;  %vm97_vm1 = vcmask 523264   ;;  %vm136_vm2 = vcmask 261120  }
   0x5   :  { %176 = vmatmul.msk.bf16.vlgmr.msra.gmra.mxu0 %vm42_vm0, %v29_v3  ;;  %v211_v7 = vld [vmem:[%s321_s2] ss:$0 sm:$0xff]  ;;  %v209_v13 = vld [vmem:[%s324_s5 + $0x8] sm:$0xff] }
   0x6   :  { %106 = vmatpush.bf16.msra.mxu1 %v206_v4  ;;  %146 = vmatpush.bf16.msra.mxu2 %v209_v13  ;;  %v208_v14 = vld [vmem:[%s324_s5] sm:$0xff]  ;;  %s242_s5 = smov [#allocation2]  }
   0x7   :  { %v212_v15 = vld [vmem:[%s323_s4] ss:$0 sm:$0xff]  ;;  %s161_s19 = sshll.u32 %s242_s5, 4  ;;  %s163_s4 = sshll.u32 %s326_s7, 4  ;;  %s162_s19 = int_to_ptr.vmem [resolvable:$true] %s161_s19  ;;  %s164_s4 = int_to_ptr.hbm [resolvable:$true] %s163_s4 }
   0x8   :  { %v213_v21 = vld [vmem:[%s325_s6] ss:$0 sm:$0xff] }
   0xa   :  { %107 = vmatpush.bf16.msra.mxu1 %v205_v5  ;;  %147 = vmatpush.bf16.msra.mxu2 %v208_v14 }
   0xe   :  { %108 = vmatpush.bf16.msra.mxu1 %v204_v6 }
  0x82   :  { %v55_v8 = vpop.f32.mrf.mxu0 }
  0x83   :  { %v56_v9 = vadd.f32 %v211_v7, %v55_v8 }
  0x85   :  { %v59_v10 = vmax.f32 %v56_v9, 0.0 }
  0x87   :  { %v60_v11 = vpack.c.bf16 %v59_v10, %v59_v10 }
  0x89   :  { %193 = vmatmul.msk.bf16.vlgmr.msra.gmra.mxu1 %vm97_vm1, %v60_v11 }
  0x8a   :  { %v57_v12 = vpop.f32.mrf.mxu0 }
 0x106   :  { %v110_v16 = vpop.f32.mrf.mxu1 }
 0x107   :  { %v111_v17 = vadd.f32 %v212_v15, %v110_v16 }
 0x109   :  { %v114_v18 = vmax.f32 %v111_v17, 0.0 }
 0x10b   :  { %v115_v19 = vpack.c.bf16 %v114_v18, %v114_v18 }
 0x10d   :  { %202 = vmatmul.msk.bf16.vlgmr.msra.gmra.mxu2 %vm136_vm2, %v115_v19 }
 0x10e   :  { %v112_v20 = vpop.f32.mrf.mxu1 }
 0x190   :  { %v149_v22 = vpop.f32.mrf.mxu2 }
 0x191   :  { %v150_v23 = vadd.f32 %v213_v21, %v149_v22 }
 0x193   :  { %214 = vtanh.f32 %v150_v23 }
 0x198   :  { %v151_v24 = vpop.f32.mrf.mxu2 }
 0x199   :  { %v215_v25 = vpop.eup %214 }
 0x19a   :  { %v154_v26 = vpack.c.bf16 %v215_v25, %v215_v25 }
 0x19c   :  { %155 = vst [vmem:[#allocation2] sm:$0xf] %v154_v26 }
 0x19d   :  { %166 = dma.vmem_to_hbm [thread:$0]  %s162_s19, 64, %s164_s4, [#allocation3]  }
 0x19e   :  { %240 = dma.done.wait [#allocation3], 64  }
 0x19f   :  { %241 = vsyncadd [#allocation3], 4294967232 }
 0x1a0   :  { %171 = vsyncpa [#allocation3], 1 }

</bundles_post_ra>
